<compile_context>
chip_gen: v7x
topology: tpu7x:2x2x1
jax: 0.10.0
libtpu: 0.0.40
codegen_flags: <defaults>
</compile_context>

<pallas_src>
import functools

import jax
import jax.numpy as jnp
from jax.experimental import pallas as pl
from jax.experimental.pallas import tpu as pltpu

DROPOUT_P = 0.2


def _ffn_kernel(x_ref, w1_ref, b1_ref, w2_ref, b2_ref, *rest, training: bool):
    if training:
        mask_ref, o_ref, acc_ref = rest
    else:
        o_ref, acc_ref = rest
        mask_ref = None

    h_idx = pl.program_id(1)

    @pl.when(h_idx == 0)
    def _():
        acc_ref[...] = jnp.zeros_like(acc_ref)

    # First linear over this H chunk (+ bias, ReLU); f32 accumulation on MXU.
    h = jnp.dot(x_ref[...], w1_ref[...], preferred_element_type=jnp.float32)
    h = jnp.maximum(h + b1_ref[...], 0.0)

    # Second linear: this H chunk's contribution, accumulated in f32 scratch.
    acc_ref[...] += jnp.dot(h.astype(w2_ref.dtype), w2_ref[...],
                            preferred_element_type=jnp.float32)

    @pl.when(h_idx == pl.num_programs(1) - 1)
    def _():
        y = acc_ref[...] + b2_ref[...]
        if training:
            y = y * mask_ref[...]        # pre-scaled keep mask: 0 or 1/(1-p)
        o_ref[...] = y.astype(o_ref.dtype)


def _pick_tile(extent, target, multiple):
    """Largest tile <= target that is a multiple of `multiple` and divides extent."""
    t = min(target, extent)
    t = (t // multiple) * multiple
    while t >= multiple and extent % t != 0:
        t -= multiple
    if t < multiple:
        t = extent  # full-extent block is always legal
    return t


def feed_forward(x, params, *, training=False, seed=0,
                 tile_m=256, tile_h=512, compute_dtype=jnp.bfloat16):
    """x: (B, T, C). params: (w1 (C,4C), b1 (1,4C), w2 (4C,C), b2 (1,C))."""
    w1, b1, w2, b2 = params
    B, T, C = x.shape
    H = w1.shape[1]
    M = B * T

    sub = 16 if compute_dtype == jnp.bfloat16 else 8
    tm = _pick_tile(M, tile_m, sub)
    th = _pick_tile(H, tile_h, 128)

    x2 = x.reshape(M, C).astype(compute_dtype)
    w1c = w1.astype(compute_dtype)
    w2c = w2.astype(compute_dtype)
    b1f = b1.astype(jnp.float32)
    b2f = b2.astype(jnp.float32)

    in_specs = [
        pl.BlockSpec((tm, C), lambda i, h: (i, 0)),   # x row tile
        pl.BlockSpec((C, th), lambda i, h: (0, h)),   # W1 column block
        pl.BlockSpec((1, th), lambda i, h: (0, h)),   # b1 chunk
        pl.BlockSpec((th, C), lambda i, h: (h, 0)),   # W2 row block
        pl.BlockSpec((1, C), lambda i, h: (0, 0)),    # b2
    ]
    operands = [x2, w1c, b1f, w2c, b2f]

    if training:
        keep = jax.random.bernoulli(jax.random.PRNGKey(seed),
                                    1.0 - DROPOUT_P, (M, C))
        mask = keep.astype(jnp.float32) * (1.0 / (1.0 - DROPOUT_P))
        in_specs.append(pl.BlockSpec((tm, C), lambda i, h: (i, 0)))
        operands.append(mask)

    out = pl.pallas_call(
        functools.partial(_ffn_kernel, training=training),
        out_shape=jax.ShapeDtypeStruct((M, C), x.dtype),
        grid_spec=pltpu.PrefetchScalarGridSpec(
            num_scalar_prefetch=0,
            grid=(M // tm, H // th),
            in_specs=in_specs,
            out_specs=pl.BlockSpec((tm, C), lambda i, h: (i, 0)),
            scratch_shapes=[pltpu.VMEM((tm, C), jnp.float32)],
        ),
        compiler_params=pltpu.CompilerParams(
            dimension_semantics=("parallel", "arbitrary"),
            vmem_limit_bytes=48 * 1024 * 1024,
        ),
    )(*operands)
    return out.reshape(B, T, C)


def _reference(x2, params, compute_dtype=jnp.bfloat16):
    """Pure-JAX reference using the same dtype strategy as the kernel."""
    w1, b1, w2, b2 = params
    xc = x2.astype(compute_dtype)
    h = jnp.dot(xc, w1.astype(compute_dtype),
                preferred_element_type=jnp.float32) + b1.astype(jnp.float32)
    h = jnp.maximum(h, 0.0)
    y = jnp.dot(h.astype(compute_dtype), w2.astype(compute_dtype),
                preferred_element_type=jnp.float32) + b2.astype(jnp.float32)
    return y.astype(x2.dtype)


def init_params(key, n_embed):
    """Deterministic init mimicking nn.Linear default (uniform +/- 1/sqrt(fan_in))."""
    hidden = 4 * n_embed
    k1, k2, k3, k4 = jax.random.split(key, 4)
    bnd1 = 1.0 / (n_embed ** 0.5)
    bnd2 = 1.0 / (hidden ** 0.5)
    w1 = jax.random.uniform(k1, (n_embed, hidden), jnp.float32, -bnd1, bnd1)
    b1 = jax.random.uniform(k2, (1, hidden), jnp.float32, -bnd1, bnd1)
    w2 = jax.random.uniform(k3, (hidden, n_embed), jnp.float32, -bnd2, bnd2)
    b2 = jax.random.uniform(k4, (1, n_embed), jnp.float32, -bnd2, bnd2)
    return w1, b1, w2, b2


if __name__ == "__main__":
    # Shapes consistent with the module: n_embed=384, small batch/sequence.
    n_embed = 384
    B, T = 2, 8

    key = jax.random.PRNGKey(0)
    kp, kx = jax.random.split(key)
    params = init_params(kp, n_embed)
    x = jax.random.normal(kx, (B, T, n_embed), jnp.float32)

    # Eval-mode forward (Dropout is identity) + one training-mode call to
    # exercise the fused dropout-mask path.
    y_eval = feed_forward(x, params, training=False)
    y_train = feed_forward(x, params, training=True, seed=1234)
    jax.block_until_ready((y_eval, y_train))

    y_ref = _reference(x.reshape(-1, n_embed), params).reshape(B, T, n_embed)

    assert y_eval.shape == (B, T, n_embed)
    assert y_train.shape == (B, T, n_embed)
    assert bool(jnp.all(jnp.isfinite(y_eval)))
    assert bool(jnp.all(jnp.isfinite(y_train)))
    assert bool(jnp.allclose(y_eval, y_ref, atol=2e-2, rtol=2e-2)), \
        "kernel output mismatch vs reference"
    print("KERNEL_OK")
</pallas_src>

<mosaic_0001>
module attributes {stable_mosaic.version = 11 : i64} {
  func.func @_ffn_kernel(%arg0: i32, %arg1: i32, %arg2: memref<16x384xbf16, #tpu.memory_space<vmem>>, %arg3: memref<384x512xbf16, #tpu.memory_space<vmem>>, %arg4: memref<1x512xf32, #tpu.memory_space<vmem>>, %arg5: memref<512x384xbf16, #tpu.memory_space<vmem>>, %arg6: memref<1x384xf32, #tpu.memory_space<vmem>>, %arg7: memref<16x384xf32, #tpu.memory_space<vmem>>, %arg8: memref<16x384xf32, #tpu.memory_space<vmem>>) attributes {dimension_semantics = [#tpu.dimension_semantics<parallel>, #tpu.dimension_semantics<arbitrary>], iteration_bounds = array<i64: 1, 3>, scalar_prefetch = 0 : i64, scratch_operands = 1 : i64, tpu.core_type = #tpu.core_type<tc>, window_params = [{transform_indices = @transform_0, window_bounds = array<i64: 16, 384>}, {transform_indices = @transform_1, window_bounds = array<i64: 384, 512>}, {transform_indices = @transform_2, window_bounds = array<i64: 1, 512>}, {transform_indices = @transform_3, window_bounds = array<i64: 512, 384>}, {pipeline_mode = #tpu.pipeline_mode<synchronous>, transform_indices = @transform_4, window_bounds = array<i64: 1, 384>}, {transform_indices = @transform_5, window_bounds = array<i64: 16, 384>}]} {
    %c0_i32 = arith.constant 0 : i32
    %0 = arith.cmpi eq, %arg1, %c0_i32 : i32
    %1 = arith.extui %0 : i1 to i32
    %c0_i32_0 = arith.constant 0 : i32
    %2 = arith.cmpi ne, %1, %c0_i32_0 : i32
    scf.if %2 {
      %cst_15 = arith.constant 0.000000e+00 : f32
      %20 = vector.broadcast %cst_15 : f32 to vector<16x384xf32>
      %c0_16 = arith.constant 0 : index
      %c0_17 = arith.constant 0 : index
      %21 = vector.load %arg8[%c0_16, %c0_17] : memref<16x384xf32, #tpu.memory_space<vmem>>, vector<16x384xf32>
      tpu.vector_store %arg8[%c0_16, %c0_17], %20 {strides = array<i32>} : memref<16x384xf32, #tpu.memory_space<vmem>>, vector<16x384xf32>,
    } else {
    }
    %c0 = arith.constant 0 : index
    %c0_1 = arith.constant 0 : index
    %3 = vector.load %arg2[%c0, %c0_1] : memref<16x384xbf16, #tpu.memory_space<vmem>>, vector<16x384xbf16>
    %c0_2 = arith.constant 0 : index
    %c0_3 = arith.constant 0 : index
    %4 = vector.load %arg3[%c0_2, %c0_3] : memref<384x512xbf16, #tpu.memory_space<vmem>>, vector<384x512xbf16>
    %cst = arith.constant dense<0.000000e+00> : vector<16x512xf32>
    %5 = tpu.matmul %3, %4, %cst {dimension_numbers = #tpu.dot_dimension_numbers<[1], [0], [0], [1], [0, 0, 1, 1], [], []>} : vector<16x384xbf16>, vector<384x512xbf16>, vector<16x512xf32> -> vector<16x512xf32>
    %c0_4 = arith.constant 0 : index
    %c0_5 = arith.constant 0 : index
    %6 = vector.load %arg4[%c0_4, %c0_5] : memref<1x512xf32, #tpu.memory_space<vmem>>, vector<1x512xf32>
    %7 = vector.broadcast %6 : vector<1x512xf32> to vector<16x512xf32>
    %8 = arith.addf %5, %7 : vector<16x512xf32>
    %cst_6 = arith.constant 0.000000e+00 : f32
    %9 = vector.broadcast %cst_6 : f32 to vector<16x512xf32>
    %10 = arith.maximumf %8, %9 : vector<16x512xf32>
    %c0_7 = arith.constant 0 : index
    %c0_8 = arith.constant 0 : index
    %11 = vector.load %arg8[%c0_7, %c0_8] : memref<16x384xf32, #tpu.memory_space<vmem>>, vector<16x384xf32>
    %12 = arith.truncf %10 : vector<16x512xf32> to vector<16x512xbf16>
    %c0_9 = arith.constant 0 : index
    %c0_10 = arith.constant 0 : index
    %13 = vector.load %arg5[%c0_9, %c0_10] : memref<512x384xbf16, #tpu.memory_space<vmem>>, vector<512x384xbf16>
    %cst_11 = arith.constant dense<0.000000e+00> : vector<16x384xf32>
    %14 = tpu.matmul %12, %13, %cst_11 {dimension_numbers = #tpu.dot_dimension_numbers<[1], [0], [0], [1], [0, 0, 1, 1], [], []>} : vector<16x512xbf16>, vector<512x384xbf16>, vector<16x384xf32> -> vector<16x384xf32>
    %15 = arith.addf %11, %14 : vector<16x384xf32>
    %c0_12 = arith.constant 0 : index
    %c0_13 = arith.constant 0 : index
    %16 = vector.load %arg8[%c0_12, %c0_13] : memref<16x384xf32, #tpu.memory_space<vmem>>, vector<16x384xf32>
    tpu.vector_store %arg8[%c0_12, %c0_13], %15 {strides = array<i32>} : memref<16x384xf32, #tpu.memory_space<vmem>>, vector<16x384xf32>,
    %c2_i32 = arith.constant 2 : i32
    %17 = arith.cmpi eq, %arg1, %c2_i32 : i32
    %18 = arith.extui %17 : i1 to i32
    %c0_i32_14 = arith.constant 0 : i32
    %19 = arith.cmpi ne, %18, %c0_i32_14 : i32
    scf.if %19 {
      %c0_15 = arith.constant 0 : index
      %c0_16 = arith.constant 0 : index
      %20 = vector.load %arg8[%c0_15, %c0_16] : memref<16x384xf32, #tpu.memory_space<vmem>>, vector<16x384xf32>
      %c0_17 = arith.constant 0 : index
      %c0_18 = arith.constant 0 : index
      %21 = vector.load %arg6[%c0_17, %c0_18] : memref<1x384xf32, #tpu.memory_space<vmem>>, vector<1x384xf32>
      %22 = vector.broadcast %21 : vector<1x384xf32> to vector<16x384xf32>
      %23 = arith.addf %20, %22 : vector<16x384xf32>
      %c0_19 = arith.constant 0 : index
      %c0_20 = arith.constant 0 : index
      %24 = vector.load %arg7[%c0_19, %c0_20] : memref<16x384xf32, #tpu.memory_space<vmem>>, vector<16x384xf32>
      tpu.vector_store %arg7[%c0_19, %c0_20], %23 {strides = array<i32>} : memref<16x384xf32, #tpu.memory_space<vmem>>, vector<16x384xf32>,
    } else {
    }
    return
  }
  func.func @transform_0(%arg0: i32, %arg1: i32) -> (i32, i32) {
    %c0_i32 = arith.constant 0 : i32
    %c0_i32_0 = arith.constant 0 : i32
    return %arg0, %c0_i32 : i32, i32
  }
  func.func @transform_1(%arg0: i32, %arg1: i32) -> (i32, i32) {
    %c0_i32 = arith.constant 0 : i32
    %c0_i32_0 = arith.constant 0 : i32
    return %c0_i32, %arg1 : i32, i32
  }
  func.func @transform_2(%arg0: i32, %arg1: i32) -> (i32, i32) {
    %c0_i32 = arith.constant 0 : i32
    %c0_i32_0 = arith.constant 0 : i32
    return %c0_i32, %arg1 : i32, i32
  }
  func.func @transform_3(%arg0: i32, %arg1: i32) -> (i32, i32) {
    %c0_i32 = arith.constant 0 : i32
    %c0_i32_0 = arith.constant 0 : i32
    return %arg1, %c0_i32 : i32, i32
  }
  func.func @transform_4(%arg0: i32, %arg1: i32) -> (i32, i32) {
    %c0_i32 = arith.constant 0 : i32
    %c0_i32_0 = arith.constant 0 : i32
    %c0_i32_1 = arith.constant 0 : i32
    return %c0_i32, %c0_i32_0 : i32, i32
  }
  func.func @transform_5(%arg0: i32, %arg1: i32) -> (i32, i32) {
    %c0_i32 = arith.constant 0 : i32
    %c0_i32_0 = arith.constant 0 : i32
    return %arg0, %c0_i32 : i32, i32
  }
}

</mosaic_0001>

<bundles_post_ra>
// kernel: tpu_custom_call.1
= control target key start
LH: loop header
LB: loop body
LE: loop exit
PB: predicated region body
PF: predicated region fallthrough
CT: control target
= control target key end

     0   :  { %s3656_s0 = inlined_call_operand.hbm [shape: bf16[16,384], index: 0, kind: input, shape index: {}]   ;;  %s3657_s1 = inlined_call_operand.hbm [shape: bf16[384,1536], index: 1, kind: input, shape index: {}]   ;;  %s3658_s2 = inlined_call_operand.hbm [shape: f32[1,1536], index: 2, kind: input, shape index: {}]   ;;  %s3659_s3 = inlined_call_operand.hbm [shape: bf16[1536,384], index: 3, kind: input, shape index: {}]   ;;  %s3660_s4 = inlined_call_operand.hbm [shape: f32[1,384], index: 4, kind: input, shape index: {}]   ;;  %s3661_s5 = inlined_call_operand.hbm [shape: f32[16,384], index: 5, kind: output, shape index: {}]  }
   0x1   :  { %3676 = sst [smem:[#allocation21_spill]] %s3657_s1 }
   0x2   :  { %3677 = sst [smem:[#allocation22_spill]] %s3660_s4 }
   0x3   :  { %3678 = sst [smem:[#allocation23_spill]] %s3661_s5 }
   0x4   :  { %10 = vsyncpa [#allocation4], 0 }
   0x5   :  { %11 = vsyncpa [#allocation7], 0 }
   0x6   :  { %13 = vsyncpa [#allocation7 + $0x1], 0 }
   0x7   :  { %14 = vsyncpa [#allocation10], 0 }
   0x8   :  { %16 = vsyncpa [#allocation10 + $0x1], 0 }
   0x9   :  { %17 = vsyncpa [#allocation5], 0  ;;  %s3134_s18 = smov 0   ;;  %s3136_s19 = smov 0  }
   0xa   :  { %s3138_s20 = smov 0   ;;  %s3140_s21 = smov 0  }
   0xb   :  { %s3142_s22 = smov 0   ;;  %s3144_s23 = smov 0  }
   0xc LB: > { %3679 = sst [smem:[#allocation18_spill]] %s3079_s21  ;;  %s3163_s24 = sadd.s32 4294967295, %s3087_s23   ;;  %s3087_s23 = sphi %s3144_s23, %s23_s23   ;;  %s3083_s22 = sphi %s3142_s22, %s3712_s22   ;;  %s3079_s21 = sphi %s3140_s21, %s3711_s21   ;;  %s3075_s20 = sphi %s3138_s20, %s3710_s20   ;;  %s3071_s19 = sphi %s3136_s19, %s3709_s19   ;;  %s3067_s18 = sphi %s3134_s18, %s3708_s18  }
   0xd   : > { %s68_s25 = sadd.s32 1, %s3075_s20  ;;  %p75_p0 = scmp.ne.s32.totalorder %s3075_s20, %s3071_s19 }
   0xe   : > { %p76_p1 = scmp.eq.s32.totalorder %s3087_s23, 0  ;;  %p81_p2 = scmp.ne.s32.totalorder %s3071_s19, %s3067_s18 }
   0xf   : > { %p3662_p3 = scmp.eq.s32.totalorder %s3163_s24, 0  ;;  %p2184_p5 = scmp.ge.s32.totalorder %s3087_s23, 1 }
  0x10   : > { %p77_p4 = por %p76_p1, %p75_p0  ;;  %p191_p7 = scmp.lt.s32.totalorder %s3087_s23, 4 }
  0x11   : > { %p3174_p6 = por %p3662_p3, %p81_p2  ;;  %s3089_s28 = smov [#allocation11]  }
  0x12   : > { %p3179_p8 = pnand %p2184_p5, %p191_p7  ;;  %s221_s29 = sshll.u32 %s3089_s28, 4  ;;  %s222_s29 = int_to_ptr.vmem [resolvable:$true] %s221_s29 }
  0x13   : > { %s3680_s26 = scalar_select %p3174_p6, 1, 0 }
  0x14   : > { %s3681_s27 = scalar_select %p3179_p8, 1, 0 }
  0x15   : > { %p2489_p9 = pneg %p3179_p8  ;;  %p2508_p10 = scmp.lt.s32.totalorder %s3087_s23, 3 }
  0x16   : > { %s3666_s30 = sand.u32 1, %s3087_s23   ;;  %s3684_s4 = sld [smem:[#allocation22_spill]] }
  0x17   : > { %p3189_p11 = pnand %p2489_p9, %p3662_p3  ;;  %p3193_p12 = pnand %p2508_p10, %p77_p4 }
  0x19   : > { %s3682_s6 = scalar_select %p3189_p11, 1, 0 }
  0x1a   : > { %s3683_s7 = scalar_select %p3193_p12, 1, 0 }
  0x1b   : > { %p3667_p0 = pneg %p3189_p11 }
  0x1c   : > { %s2849_s10 = scalar_lea.hbm %s3684_s4, 48 }
  0x1d   : > { %p2850_p13 = scmp.ne.s32.totalorder %s3684_s4, %s2849_s10  ;;  %p2856_p4 = scmp.lt.u32.totalorder %s2849_s10, %s3684_s4 }
  0x1f   : > { %p2852_p1 = pnand %p3667_p0, %p2850_p13 }
  0x21   : > { %p2853_p2 = pneg %p2852_p1 }
  0x23   : > { %p2858_p5 = pnand %p2856_p4, %p2853_p2 }
  0x25   : > { %2861 = shalt.err (!%p2858_p5)
}
  0x26   : > { %s2862_s15 = scalar_lea.vmem %s222_s29, 48  ;;  %s2869_s16 = scalar_lea.vmem %s222_s29, 64 }
  0x27   : > { %p2863_p7 = scmp.ne.s32.totalorder %s222_s29, %s2862_s15  ;;  %p2870_p3 = scmp.lt.s32.totalorder %s222_s29, %s222_s29 }
  0x28   : > { %p2871_p6 = scmp.lt.s32.totalorder %s2869_s16, %s2862_s15 }
  0x29   : > { %p2865_p9 = pnand %p2863_p7, %p3667_p0 }
  0x2a   : > { %p2872_p8 = por %p2871_p6, %p2870_p3 }
  0x2b   : > { %p2866_p10 = pneg %p2865_p9 }
  0x2d   : > { %p2873_p12 = pnand %p2872_p8, %p2866_p10 }
  0x2f   : > { %2876 = shalt.err (!%p2873_p12)
}
  0x30   : > { %2495 = dma.hbm_to_vmem [thread:$0]  (!%p3189_p11), %s3684_s4, 48, %s222_s29, [#allocation10]  }
  0x31   : > { %s32_s28 = sadd.s32 1, %s3083_s22  ;;  %s3670_s8 = sand.u32 1, %s3075_s20  }
  0x32   : > { %p33_p3 = scmp.ge.s32.totalorder %s32_s28, 3  ;;  %s3223_s9 = smul.u32 768, %s3670_s8 }
  0x33   : > { %s2401_s10 = sshll.u32 %s3083_s22, 8  ;;  %s3686_s1 = sld [smem:[#allocation21_spill]] }
  0x34   : > { %s3714_s28 = smov (%p33_p3, %s32_s28), 0  ;;  %s236_s14 = scalar_lea.vmem [#allocation6], %s3223_s9 }
  0x35   : > { %3685 = sst [smem:[#allocation19_spill]] %s3714_s28  ;;  %s65_s29 = ssub.s32 %s3083_s22, %s3714_s28 }
  0x36   : > { %s243_s15 = sshll.u32 %s236_s14, 4  ;;  %p66_p6 = scmp.eq.s32.totalorder %s65_s29, 0  ;;  %s3236_s15 = int_to_ptr.vmem [resolvable:$true] %s243_s15 }
  0x37   : > { %s3245_s17 = scalar_lea.sflag [#allocation7], %s3666_s30  ;;  %p3688_p12 = scmp.ne.s32.totalorder %s3683_s7, 0 }
  0x38   : > { %s3241_s16 = scalar_select %p66_p6, %s3075_s20, %s68_s25  }
  0x39   : > { %s3231_s13 = scalar_lea.hbm %s3686_s1, %s2401_s10  ;;  %p3251_p13 = pneg %p3688_p12 }
  0x3a   : > { %3687 = sst [smem:[#allocation20_spill]] %s3241_s16  ;;  %s2877_s18 = scalar_lea.hbm %s3231_s13, 12288 }
  0x3b   : > { %p2878_p8 = scmp.ne.s32.totalorder %s3231_s13, %s2877_s18  ;;  %s2882_s29 = scalar_lea.hbm %s3686_s1, 36864 }
  0x3c   : > { %s3689_s10 = scalar_select %p3251_p13, 1, 0 }
  0x3d   : > { %p2880_p1 = pnand %p3251_p13, %p2878_p8  ;;  %p2883_p4 = scmp.lt.u32.totalorder %s3231_s13, %s3686_s1 }
  0x3e   : > { %p2884_p5 = scmp.lt.u32.totalorder %s2882_s29, %s2877_s18  ;;  %p2886_p9 = scmp.lt.u32.totalorder %s2877_s18, %s3231_s13 }
  0x3f   : > { %p2881_p2 = pneg %p2880_p1 }
  0x40   : > { %p2885_p7 = por %p2884_p5, %p2883_p4 }
  0x42   : > { %p2887_p10 = por %p2886_p9, %p2885_p7 }
  0x44   : > { %p2888_p3 = pnand %p2887_p10, %p2881_p2 }
  0x46   : > { %2891 = shalt.err (!%p2888_p3)
}
  0x47   : > { %s2892_s30 = scalar_lea.vmem %s3236_s15, 12288  ;;  %s3090_s11 = smov [#allocation6]  }
  0x48   : > { %p2893_p6 = scmp.ne.s32.totalorder %s3236_s15, %s2892_s30  ;;  %s2897_s12 = sshll.u32 %s3090_s11, 4  ;;  %s2898_s12 = int_to_ptr.vmem [resolvable:$false] %s2897_s12 }
  0x49   : > { %s2899_s25 = scalar_lea.vmem %s2898_s12, 24576  ;;  %p2900_p0 = scmp.lt.s32.totalorder %s3236_s15, %s2898_s12 }
  0x4a   : > { %p2895_p8 = pnand %p2893_p6, %p3251_p13  ;;  %p2901_p11 = scmp.lt.s32.totalorder %s2899_s25, %s2892_s30 }
  0x4c   : > { %p2896_p1 = pneg %p2895_p8  ;;  %p2902_p4 = por %p2901_p11, %p2900_p0 }
  0x4e   : > { %p2903_p5 = pnand %p2902_p4, %p2896_p1 }
  0x50   : > { %2906 = shalt.err (!%p2903_p5)
}
  0x51   : > { %s3091_s18 = smov 768   ;;  %s3092_s29 = smov 256  }
  0x52   : > { %s3093_s14 = smov 16   ;;  %s3094_s8 = smov [#allocation3]  }
  0x53   : > { %2499 = dma.hbm_to_vmem [thread:$0]  (!%p3688_p12), %s3231_s13, 12288, %s3236_s15, %s3245_s17, %s3091_s18, %s3092_s29, %s3093_s14  }
  0x54   : > { %s207_s11 = sshll.u32 %s3094_s8, 4  ;;  %s3690_s1 = sand.u32 1, %s3075_s20   ;;  %s208_s11 = int_to_ptr.vmem [resolvable:$true] %s207_s11 }
  0x55   : > { %s2190_s12 = sshll.u32 %s3690_s1, 2  ;;  %s2907_s4 = scalar_lea.hbm %s3656_s0, 384 }
  0x56   : > { %p2908_p11 = scmp.ne.s32.totalorder %s3656_s0, %s2907_s4  ;;  %p3691_p0 = scmp.ne.s32.totalorder %s3682_s6, 0 }
  0x57   : > { %p2914_p10 = scmp.lt.u32.totalorder %s2907_s4, %s3656_s0 }
  0x58   : > { %p3692_p2 = pneg %p3691_p0 }
  0x5a   : > { %p2910_p7 = pnand %p2908_p11, %p3692_p2 }
  0x5c   : > { %p2911_p9 = pneg %p2910_p7 }
  0x5e   : > { %p2916_p3 = pnand %p2914_p10, %p2911_p9 }
  0x60   : > { %2919 = shalt.err (!%p2916_p3)
}
  0x61   : > { %s2920_s8 = scalar_lea.vmem %s208_s11, 384  ;;  %p3693_p8 = pmov %p3692_p2 }
  0x62   : > { %p2921_p6 = scmp.ne.s32.totalorder %s208_s11, %s2920_s8  ;;  %p2928_p5 = scmp.lt.s32.totalorder %s208_s11, %s208_s11 }
  0x63   : > { %p2929_p12 = scmp.lt.s32.totalorder %s2920_s8, %s2920_s8 }
  0x64   : > { %p2923_p1 = pnand %p2921_p6, %p3693_p8 }
  0x65   : > { %p2930_p13 = por %p2929_p12, %p2928_p5 }
  0x66   : > { %p2924_p4 = pneg %p2923_p1 }
  0x68   : > { %p2931_p2 = pnand %p2930_p13, %p2924_p4 }
  0x6a   : > { %2934 = shalt.err (!%p2931_p2)
}
  0x6b   : > { %s3095_s1 = smov 192   ;;  %s3096_s5 = smov 12  }
  0x6c   : > { %2492 = dma.hbm_to_vmem [thread:$0]  (!%p3691_p0), %s3656_s0, 384, %s208_s11, [#allocation4], %s3095_s1, %s3095_s1, %s3096_s5  }
  0x6d   : > { %s2402_s28 = sshll.u32 %s3083_s22, 6  ;;  %s257_s18 = scalar_lea.vmem [#allocation8], %s2190_s12 }
  0x6e   : > { %s3304_s16 = scalar_lea.hbm %s3658_s2, %s2402_s28  ;;  %s265_s29 = sshll.u32 %s257_s18, 4  ;;  %s266_s29 = int_to_ptr.vmem [resolvable:$true] %s265_s29 }
  0x6f   : > { %s2935_s6 = scalar_lea.hbm %s3304_s16, 64  ;;  %p3694_p13 = scmp.ne.s32.totalorder %s3689_s10, 0 }
  0x70   : > { %p2936_p12 = scmp.ne.s32.totalorder %s3304_s16, %s2935_s6  ;;  %s2940_s30 = scalar_lea.hbm %s3658_s2, 192 }
  0x71   : > { %p2941_p0 = scmp.lt.u32.totalorder %s3304_s16, %s3658_s2  ;;  %p2942_p9 = scmp.lt.u32.totalorder %s2940_s30, %s2935_s6 }
  0x72   : > { %p2938_p11 = pnand %p2936_p12, %p3694_p13  ;;  %p2944_p3 = scmp.lt.u32.totalorder %s2935_s6, %s3304_s16 }
  0x73   : > { %p2943_p10 = por %p2942_p9, %p2941_p0 }
  0x74   : > { %p2939_p7 = pneg %p2938_p11 }
  0x75   : > { %p2945_p6 = por %p2944_p3, %p2943_p10 }
  0x77   : > { %p2946_p8 = pnand %p2945_p6, %p2939_p7 }
  0x79   : > { %2949 = shalt.err (!%p2946_p8)
}
  0x7a   : > { %s2950_s12 = scalar_lea.vmem %s266_s29, 64  ;;  %s3097_s4 = smov [#allocation8]  }
  0x7b   : > { %p2951_p1 = scmp.ne.s32.totalorder %s266_s29, %s2950_s12  ;;  %s2955_s21 = sshll.u32 %s3097_s4, 4  ;;  %s2956_s21 = int_to_ptr.vmem [resolvable:$false] %s2955_s21 }
  0x7c   : > { %s2957_s28 = scalar_lea.vmem %s2956_s21, 128  ;;  %p2958_p2 = scmp.lt.s32.totalorder %s266_s29, %s2956_s21 }
  0x7d   : > { %p2953_p4 = pnand %p2951_p1, %p3694_p13  ;;  %p2959_p12 = scmp.lt.s32.totalorder %s2957_s28, %s2950_s12 }
  0x7f   : > { %p2954_p5 = pneg %p2953_p4  ;;  %p2960_p11 = por %p2959_p12, %p2958_p2 }
  0x81   : > { %p2961_p0 = pnand %p2960_p11, %p2954_p5 }
  0x83   : > { %2964 = shalt.err (!%p2961_p0)
}
  0x84   : > { %p3695_p9 = scmp.ne.s32.totalorder %s3683_s7, 0  ;;  %s2469_s13 = smul.u32 12288, %s3083_s22 }
  0x85   : > { %s276_s15 = scalar_lea.vmem [#allocation9], %s3223_s9  ;;  %s3696_s30 = sand.u32 1, %s3087_s23  }
  0x86   : > { %2502 = dma.hbm_to_vmem [thread:$0]  (!%p3695_p9), %s3304_s16, 64, %s266_s29, %s3245_s17  }
  0x87   : > { %s284_s18 = sshll.u32 %s276_s15, 4  ;;  %s3329_s11 = scalar_lea.hbm %s3659_s3, %s2469_s13  ;;  %s3331_s18 = int_to_ptr.vmem [resolvable:$true] %s284_s18 }
  0x88   : > { %s3335_s25 = scalar_lea.sflag [#allocation10], %s3696_s30  ;;  %s2965_s8 = scalar_lea.hbm %s3329_s11, 12288 }
  0x89   : > { %p2966_p7 = scmp.ne.s32.totalorder %s3329_s11, %s2965_s8  ;;  %s2970_s16 = scalar_lea.hbm %s3659_s3, 36864 }
  0x8a   : > { %p2971_p6 = scmp.lt.u32.totalorder %s3329_s11, %s3659_s3  ;;  %p2972_p8 = scmp.lt.u32.totalorder %s2970_s16, %s2965_s8 }
  0x8b   : > { %p2968_p10 = pnand %p2966_p7, %p3694_p13  ;;  %p2974_p4 = scmp.lt.u32.totalorder %s2965_s8, %s3329_s11 }
  0x8c   : > { %p2973_p1 = por %p2972_p8, %p2971_p6 }
  0x8d   : > { %p2969_p3 = pneg %p2968_p10 }
  0x8e   : > { %p2975_p5 = por %p2974_p4, %p2973_p1 }
  0x90   : > { %p2976_p2 = pnand %p2975_p5, %p2969_p3 }
  0x92   : > { %2979 = shalt.err (!%p2976_p2)
}
  0x93   : > { %s2980_s4 = scalar_lea.vmem %s3331_s18, 12288  ;;  %s3098_s21 = smov [#allocation9]  }
  0x94   : > { %p2981_p12 = scmp.ne.s32.totalorder %s3331_s18, %s2980_s4  ;;  %s2985_s28 = sshll.u32 %s3098_s21, 4  ;;  %s2986_s28 = int_to_ptr.vmem [resolvable:$false] %s2985_s28 }
  0x95   : > { %s2987_s13 = scalar_lea.vmem %s2986_s28, 24576  ;;  %p2988_p7 = scmp.lt.s32.totalorder %s3331_s18, %s2986_s28 }
  0x96   : > { %p2983_p11 = pnand %p2981_p12, %p3694_p13  ;;  %p2989_p10 = scmp.lt.s32.totalorder %s2987_s13, %s2980_s4 }
  0x98   : > { %p2984_p0 = pneg %p2983_p11  ;;  %p2990_p6 = por %p2989_p10, %p2988_p7 }
  0x9a   : > { %p2991_p8 = pnand %p2990_p6, %p2984_p0 }
  0x9c   : > { %2994 = shalt.err (!%p2991_p8)
}
  0x9d   : > { %2505 = dma.hbm_to_vmem [thread:$0]  (!%p3695_p9), %s3329_s11, 12288, %s3331_s18, %s3335_s25, %s3095_s1, %s3095_s1, %s3096_s5  }
  0x9e   : > { %p3697_p13 = scmp.ne.s32.totalorder %s3681_s27, 0 }
  0x9f   : > { %p3698_p3 = scmp.eq.s32.totalorder (!%p3697_p13), %s3163_s24, 0 }
  0xa0   : > { %296 = sbr.rel (%p3697_p13) target bundleno = 810 (0x32a), region = 40 }
  0xa7   : > { %3046 = dma.done.wait (%p3698_p3), [#allocation4], 384   ;;  %p3699_p1 = pmov %p3698_p3 }
  0xa8   : > { %s302_s7 = sand.u32 1, %s3163_s24   ;;  %s304_s10 = sand.u32 1, %s3071_s19  }
  0xa9   : > { %3048 = vsyncadd (%p3699_p1), [#allocation4], 4294966912  ;;  %s2470_s15 = smul.u32 768, %s304_s10  ;;  %s303_s6 = scalar_lea.sflag [#allocation7], %s302_s7 }
  0xaa   : > { %p3700_p4 = scmp.ne.s32.totalorder %s3680_s26, 0 }
  0xab   : > { %s3370_s14 = scalar_lea.vmem [#allocation6], %s2470_s15 }
  0xac   : > { %3050 = dma.done.wait (%p3700_p4), %s303_s6, 12352  }
  0xad   : > { %3052 = vsyncadd (%p3700_p4), %s303_s6, 4294954944  ;;  %s3376_s27 = sshll.u32 %s304_s10, 2  ;;  %s321_s5 = scalar_lea.sflag [#allocation10], %s302_s7 }
  0xae   : > { %s315_s1 = scalar_lea.vmem [#allocation8], %s3376_s27  ;;  %s3379_s18 = scalar_lea.vmem [#allocation9], %s2470_s15 }
  0xaf   : > { %3054 = dma.done.wait (%p3700_p4), %s321_s5, 12288  }
  0xb0   : > { %3056 = vsyncadd (%p3700_p4), %s321_s5, 4294955008  ;;  %p3701_p9 = pmov %p3699_p1 }
  0xb1   : > { %p3702_p5 = pmov %p3699_p1 }
  0xb2   : > { %3058 = dma.done.wait (%p3701_p9), [#allocation10], 48  }
  0xb3   : > { %3060 = vsyncadd (%p3702_p5), [#allocation10], 4294967248  ;;  %s3703_s11 = sld [smem:[#allocation18_spill]] }
  0xb9   : > { %p2200_p2 = scmp.ne.s32.totalorder %s3703_s11, 0 }
  0xba   : > { %v3099_v0 = vmov (!%p2200_p2), 0.0  }
  0xbb   : > { %369 = sbr.rel (%p2200_p2) target bundleno = 194 (0xc2), region = 64  ;;  %370 = vst [vmem:[#allocation2] sm:$0xff] (!%p2200_p2), %v3099_v0  ;;  %371 = vst [vmem:[#allocation2 + $0x8] sm:$0xff] (!%p2200_p2), %v3099_v0 }
  0xbc   : > { %372 = vst [vmem:[#allocation2 + $0x10] sm:$0xff] (!%p2200_p2), %v3099_v0  ;;  %373 = vst [vmem:[#allocation2 + $0x18] sm:$0xff] (!%p2200_p2), %v3099_v0 }
  0xbd   : > { %374 = vst [vmem:[#allocation2 + $0x20] sm:$0xff] (!%p2200_p2), %v3099_v0  ;;  %375 = vst [vmem:[#allocation2 + $0x28] sm:$0xff] (!%p2200_p2), %v3099_v0 }
  0xc2 PF: > { %v2573_v1 = vld [vmem:[%s3370_s14 + $0x4] ss:$16 sps:$4 sm:$0xff]   ;;  %v3100_v3 = vmov 0   ;;  %v2577_v4 = vld [vmem:[%s3370_s14] ss:$16 sps:$4 sm:$0xff]   ;;  %s3704_s26 = sld [smem:[#allocation18_spill]] }
  0xc3   : > { %v2575_v2 = vld [vmem:[%s3370_s14 + $0x204] ss:$16 sps:$4 sm:$0xff]   ;;  %1069 = vmatprep.mubr.bf16.mxu1 %v3100_v3  ;;  %994 = vmatprep.subr.bf16.mxu0 %v2573_v1  ;;  %v2578_v5 = vld [vmem:[%s3370_s14 + $0x200] ss:$16 sps:$4 sm:$0xff]   ;;  %v2626_v35 = vld [vmem:[%s3370_s14 + $0xc] ss:$16 sps:$4 sm:$0xff]  }
  0xc4   : > { %1037 = vmatprep.subr.bf16.mxu1 %v2575_v2  ;;  %v2579_v6 = vld [vmem:[%s3370_s14 + $0x24] ss:$16 sps:$4 sm:$0xff]   ;;  %995 = vmatpush1.bf16.msra.mxu0 %v2577_v4  ;;  %v2583_v8 = vld [vmem:[%s3370_s14 + $0x20] ss:$16 sps:$4 sm:$0xff]   ;;  %v2624_v37 = vld [vmem:[%s3370_s14 + $0x8] ss:$16 sps:$4 sm:$0xff]  }
  0xc5   : > { %1038 = vmatpush1.bf16.msra.mxu1 %v2578_v5  ;;  %v2581_v7 = vld [vmem:[%s3370_s14 + $0x224] ss:$16 sps:$4 sm:$0xff]   ;;  %996 = vmatprep.subr.bf16.mxu0 %v2579_v6  ;;  %v2584_v9 = vld [vmem:[%s3370_s14 + $0x220] ss:$16 sps:$4 sm:$0xff]   ;;  %v2632_v40 = vld [vmem:[%s3370_s14 + $0x2c] ss:$16 sps:$4 sm:$0xff]  }
  0xc6   : > { %1039 = vmatprep.subr.bf16.mxu1 %v2581_v7  ;;  %v2585_v10 = vld [vmem:[%s3370_s14 + $0x44] ss:$16 sps:$4 sm:$0xff]   ;;  %v2589_v12 = vld [vmem:[%s3370_s14 + $0x40] ss:$16 sps:$4 sm:$0xff]   ;;  %v2630_v41 = vld [vmem:[%s3370_s14 + $0x28] ss:$16 sps:$4 sm:$0xff]  }
  0xc7   : > { %v2587_v11 = vld [vmem:[%s3370_s14 + $0x244] ss:$16 sps:$4 sm:$0xff]   ;;  %v2590_v13 = vld [vmem:[%s3370_s14 + $0x240] ss:$16 sps:$4 sm:$0xff]   ;;  %v2638_v44 = vld [vmem:[%s3370_s14 + $0x4c] ss:$16 sps:$4 sm:$0xff]  }
  0xc8   : > { %997 = vmatpush1.bf16.msra.mxu0 %v2583_v8  ;;  %v2591_v14 = vld [vmem:[%s3370_s14 + $0x64] ss:$16 sps:$4 sm:$0xff]   ;;  %v2595_v16 = vld [vmem:[%s3370_s14 + $0x60] ss:$16 sps:$4 sm:$0xff]   ;;  %v2636_v45 = vld [vmem:[%s3370_s14 + $0x48] ss:$16 sps:$4 sm:$0xff]  }
  0xc9   : > { %1040 = vmatpush1.bf16.msra.mxu1 %v2584_v9  ;;  %998 = vmatprep.subr.bf16.mxu0 %v2585_v10  ;;  %v2593_v15 = vld [vmem:[%s3370_s14 + $0x264] ss:$16 sps:$4 sm:$0xff]   ;;  %v2596_v17 = vld [vmem:[%s3370_s14 + $0x260] ss:$16 sps:$4 sm:$0xff]   ;;  %v2644_v48 = vld [vmem:[%s3370_s14 + $0x6c] ss:$16 sps:$4 sm:$0xff]  }
  0xca   : > { %1041 = vmatprep.subr.bf16.mxu1 %v2587_v11  ;;  %v2597_v18 = vld [vmem:[%s3370_s14 + $0x84] ss:$16 sps:$4 sm:$0xff]   ;;  %v2601_v20 = vld [vmem:[%s3370_s14 + $0x80] ss:$16 sps:$4 sm:$0xff]   ;;  %v2642_v49 = vld [vmem:[%s3370_s14 + $0x68] ss:$16 sps:$4 sm:$0xff]  }
  0xcb   : > { %v2599_v19 = vld [vmem:[%s3370_s14 + $0x284] ss:$16 sps:$4 sm:$0xff]   ;;  %v2602_v21 = vld [vmem:[%s3370_s14 + $0x280] ss:$16 sps:$4 sm:$0xff]   ;;  %v2672_v52 = vld [vmem:[#allocation3 + $0x4] ss:$12 sps:$4 sm:$0xff]  }
  0xcc   : > { %999 = vmatpush1.bf16.msra.mxu0 %v2589_v12  ;;  %v2603_v22 = vld [vmem:[%s3370_s14 + $0xa4] ss:$16 sps:$4 sm:$0xff]   ;;  %v2607_v24 = vld [vmem:[%s3370_s14 + $0xa0] ss:$16 sps:$4 sm:$0xff]   ;;  %v2650_v53 = vld [vmem:[%s3370_s14 + $0x8c] ss:$16 sps:$4 sm:$0xff]   ;;  %1026 = vmatprep.mubr.bf16.mxu0 %v2672_v52 }
  0xcd   : > { %1042 = vmatpush1.bf16.msra.mxu1 %v2590_v13  ;;  %1000 = vmatprep.subr.bf16.mxu0 %v2591_v14  ;;  %v2605_v23 = vld [vmem:[%s3370_s14 + $0x2a4] ss:$16 sps:$4 sm:$0xff]   ;;  %v2608_v25 = vld [vmem:[%s3370_s14 + $0x2a0] ss:$16 sps:$4 sm:$0xff]   ;;  %v2648_v54 = vld [vmem:[%s3370_s14 + $0x88] ss:$16 sps:$4 sm:$0xff]  }
  0xce   : > { %1043 = vmatprep.subr.bf16.mxu1 %v2593_v15  ;;  %v2609_v26 = vld [vmem:[%s3370_s14 + $0xc4] ss:$16 sps:$4 sm:$0xff]   ;;  %v2613_v28 = vld [vmem:[%s3370_s14 + $0xc0] ss:$16 sps:$4 sm:$0xff]   ;;  %v2656_v57 = vld [vmem:[%s3370_s14 + $0xac] ss:$16 sps:$4 sm:$0xff]  }
  0xcf   : > { %v2611_v27 = vld [vmem:[%s3370_s14 + $0x2c4] ss:$16 sps:$4 sm:$0xff]   ;;  %v2614_v29 = vld [vmem:[%s3370_s14 + $0x2c0] ss:$16 sps:$4 sm:$0xff]   ;;  %v2654_v58 = vld [vmem:[%s3370_s14 + $0xa8] ss:$16 sps:$4 sm:$0xff]  }
  0xd0   : > { %1001 = vmatpush1.bf16.msra.mxu0 %v2595_v16  ;;  %v2615_v30 = vld [vmem:[%s3370_s14 + $0xe4] ss:$16 sps:$4 sm:$0xff]   ;;  %v2619_v32 = vld [vmem:[%s3370_s14 + $0xe0] ss:$16 sps:$4 sm:$0xff]   ;;  %v2662_v61 = vld [vmem:[%s3370_s14 + $0xcc] ss:$16 sps:$4 sm:$0xff]  }
  0xd1   : > { %1044 = vmatpush1.bf16.msra.mxu1 %v2596_v17  ;;  %1002 = vmatprep.subr.bf16.mxu0 %v2597_v18  ;;  %v2617_v31 = vld [vmem:[%s3370_s14 + $0x2e4] ss:$16 sps:$4 sm:$0xff]   ;;  %v2620_v33 = vld [vmem:[%s3370_s14 + $0x2e0] ss:$16 sps:$4 sm:$0xff]   ;;  %v2660_v62 = vld [vmem:[%s3370_s14 + $0xc8] ss:$16 sps:$4 sm:$0xff]  }
  0xd2   : > { %1045 = vmatprep.subr.bf16.mxu1 %v2599_v19  ;;  %v2621_v34 = vld [vmem:[%s3370_s14 + $0x104] ss:$16 sps:$4 sm:$0xff]   ;;  %v3425_v36 = vld [vmem:[#allocation3 + $0x8] ss:$12 sps:$4 sm:$0xff]   ;;  %v2666_v2 = vld [vmem:[%s3370_s14 + $0xe8] ss:$16 sps:$4 sm:$0xff]  }
  0xd3   : > { %v2627_v38 = vld [vmem:[%s3370_s14 + $0x100] ss:$16 sps:$4 sm:$0xff]   ;;  %v2628_v39 = vld [vmem:[%s3370_s14 + $0x124] ss:$16 sps:$4 sm:$0xff]   ;;  %v2668_v1 = vld [vmem:[%s3370_s14 + $0xec] ss:$16 sps:$4 sm:$0xff]  }
  0xd4   : > { %1003 = vmatpush1.bf16.msra.mxu0 %v2601_v20  ;;  %v2633_v42 = vld [vmem:[%s3370_s14 + $0x120] ss:$16 sps:$4 sm:$0xff]   ;;  %v2634_v43 = vld [vmem:[%s3370_s14 + $0x144] ss:$16 sps:$4 sm:$0xff]   ;;  %v2675_v5 = vld [vmem:[%s3370_s14 + $0x10c] ss:$16 sps:$4 sm:$0xff]  }
  0xd5   : > { %1046 = vmatpush1.bf16.msra.mxu1 %v2602_v21  ;;  %1004 = vmatprep.subr.bf16.mxu0 %v2603_v22  ;;  %v2639_v46 = vld [vmem:[%s3370_s14 + $0x140] ss:$16 sps:$4 sm:$0xff]   ;;  %v2640_v47 = vld [vmem:[%s3370_s14 + $0x164] ss:$16 sps:$4 sm:$0xff]   ;;  %v2673_v7 = vld [vmem:[%s3370_s14 + $0x108] ss:$16 sps:$4 sm:$0xff]  }
  0xd6   : > { %1047 = vmatprep.subr.bf16.mxu1 %v2605_v23  ;;  %v2645_v50 = vld [vmem:[%s3370_s14 + $0x160] ss:$16 sps:$4 sm:$0xff]   ;;  %v2646_v51 = vld [vmem:[%s3370_s14 + $0x184] ss:$16 sps:$4 sm:$0xff]   ;;  %v2678_v8 = vld [vmem:[%s3370_s14 + $0x12c] ss:$16 sps:$4 sm:$0xff]  }
  0xd7   : > { %v2651_v55 = vld [vmem:[%s3370_s14 + $0x180] ss:$16 sps:$4 sm:$0xff]   ;;  %v2652_v56 = vld [vmem:[%s3370_s14 + $0x1a4] ss:$16 sps:$4 sm:$0xff]   ;;  %v2723_v10 = vld [vmem:[%s3379_s18 + $0x4] ss:$12 sps:$4 sm:$0xff]  }
  0xd8   : > { %1005 = vmatpush1.bf16.msra.mxu0 %v2607_v24  ;;  %v2657_v59 = vld [vmem:[%s3370_s14 + $0x1a0] ss:$16 sps:$4 sm:$0xff]   ;;  %v2658_v60 = vld [vmem:[%s3370_s14 + $0x1c4] ss:$16 sps:$4 sm:$0xff]   ;;  %v2676_v11 = vld [vmem:[%s3370_s14 + $0x128] ss:$16 sps:$4 sm:$0xff]  }
  0xd9   : > { %1048 = vmatpush1.bf16.msra.mxu1 %v2608_v25  ;;  %1006 = vmatprep.subr.bf16.mxu0 %v2609_v26  ;;  %v2663_v63 = vld [vmem:[%s3370_s14 + $0x1c0] ss:$16 sps:$4 sm:$0xff]   ;;  %v2664_v0 = vld [vmem:[%s3370_s14 + $0x1e4] ss:$16 sps:$4 sm:$0xff]   ;;  %v2681_v13 = vld [vmem:[%s3370_s14 + $0x14c] ss:$16 sps:$4 sm:$0xff]  }
  0xda   : > { %1049 = vmatprep.subr.bf16.mxu1 %v2611_v27  ;;  %v2669_v4 = vld [vmem:[%s3370_s14 + $0x1e0] ss:$16 sps:$4 sm:$0xff]   ;;  %v2670_v6 = vld [vmem:[#allocation3] ss:$12 sps:$4 sm:$0xff]   ;;  %v2684_v17 = vld [vmem:[%s3370_s14 + $0x16c] ss:$16 sps:$4 sm:$0xff]  }
  0xdb   : > { %v2721_v9 = vld [vmem:[%s3379_s18] ss:$12 sps:$4 sm:$0xff]   ;;  %v2726_v12 = vld [vmem:[%s3379_s18 + $0x1c] ss:$12 sps:$4 sm:$0xff]   ;;  %v2724_v14 = vld [vmem:[%s3379_s18 + $0x18] ss:$12 sps:$4 sm:$0xff]  }
  0xdc   : > { %1007 = vmatpush1.bf16.msra.mxu0 %v2613_v28  ;;  %v2679_v15 = vld [vmem:[%s3370_s14 + $0x148] ss:$16 sps:$4 sm:$0xff]   ;;  %v2732_v19 = vld [vmem:[%s3379_s18 + $0x4c] ss:$12 sps:$4 sm:$0xff]   ;;  %v2687_v21 = vld [vmem:[%s3370_s14 + $0x18c] ss:$16 sps:$4 sm:$0xff]  }
  0xdd   : > { %1050 = vmatpush1.bf16.msra.mxu1 %v2614_v29  ;;  %1008 = vmatprep.subr.bf16.mxu0 %v2615_v30  ;;  %v2729_v16 = vld [vmem:[%s3379_s18 + $0x34] ss:$12 sps:$4 sm:$0xff]   ;;  %v2727_v18 = vld [vmem:[%s3379_s18 + $0x30] ss:$12 sps:$4 sm:$0xff]   ;;  %p2396_p12 = scmp.ne.s32.totalorder %s3704_s26, 2 }
  0xde   : > { %1051 = vmatprep.subr.bf16.mxu1 %v2617_v31  ;;  %v2682_v20 = vld [vmem:[%s3370_s14 + $0x168] ss:$16 sps:$4 sm:$0xff]   ;;  %v2730_v22 = vld [vmem:[%s3379_s18 + $0x48] ss:$12 sps:$4 sm:$0xff]  }
  0xdf   : > { %v2735_v23 = vld [vmem:[%s3379_s18 + $0x64] ss:$12 sps:$4 sm:$0xff]   ;;  %v2733_v26 = vld [vmem:[%s3379_s18 + $0x60] ss:$12 sps:$4 sm:$0xff]  }
  0xe0   : > { %1009 = vmatpush1.bf16.msra.mxu0 %v2619_v32  ;;  %v2685_v24 = vld [vmem:[%s3370_s14 + $0x188] ss:$16 sps:$4 sm:$0xff]   ;;  %v2690_v25 = vld [vmem:[%s3370_s14 + $0x1ac] ss:$16 sps:$4 sm:$0xff]  }
  0xe1   : > { %1052 = vmatpush1.bf16.msra.mxu1 %v2620_v33  ;;  %1010 = vmatprep.subr.bf16.mxu0 %v2621_v34  ;;  %v2688_v27 = vld [vmem:[%s3370_s14 + $0x1a8] ss:$16 sps:$4 sm:$0xff]   ;;  %v2693_v28 = vld [vmem:[%s3370_s14 + $0x1cc] ss:$16 sps:$4 sm:$0xff]  }
  0xe2   : > { %1080 = vmatprep.subr.bf16.mxu1 %v2626_v35  ;;  %v2691_v29 = vld [vmem:[%s3370_s14 + $0x1c8] ss:$16 sps:$4 sm:$0xff]   ;;  %v2696_v30 = vld [vmem:[%s3370_s14 + $0x1ec] ss:$16 sps:$4 sm:$0xff]  }
  0xe3   : > { %v2694_v31 = vld [vmem:[%s3370_s14 + $0x1e8] ss:$16 sps:$4 sm:$0xff]   ;;  %v2699_v32 = vld [vmem:[%s3370_s14 + $0x20c] ss:$16 sps:$4 sm:$0xff]  }
  0xe4   : > { %1070 = vmatmul.mubr.bf16.vlgmr.msra.gmra.mrb[0].mxu1 %v3425_v36  ;;  %1011 = vmatpush1.bf16.msra.mxu0 %v2627_v38  ;;  %v2697_v33 = vld [vmem:[%s3370_s14 + $0x208] ss:$16 sps:$4 sm:$0xff]   ;;  %v2702_v34 = vld [vmem:[%s3370_s14 + $0x22c] ss:$16 sps:$4 sm:$0xff]  }
  0xe5   : > { %1081 = vmatpush1.bf16.msra.mxu1 %v2624_v37  ;;  %1012 = vmatprep.subr.bf16.mxu0 %v2628_v39  ;;  %v2700_v35 = vld [vmem:[%s3370_s14 + $0x228] ss:$16 sps:$4 sm:$0xff]   ;;  %v2705_v37 = vld [vmem:[%s3370_s14 + $0x24c] ss:$16 sps:$4 sm:$0xff]  }
  0xe6   : > { %1082 = vmatprep.subr.bf16.mxu1 %v2632_v40  ;;  %1112 = vmatprep.mubr.bf16.mxu1 %v2672_v52  ;;  %v2703_v38 = vld [vmem:[%s3370_s14 + $0x248] ss:$16 sps:$4 sm:$0xff]   ;;  %v2708_v39 = vld [vmem:[%s3370_s14 + $0x26c] ss:$16 sps:$4 sm:$0xff]  }
  0xe7   : > { %v2706_v40 = vld [vmem:[%s3370_s14 + $0x268] ss:$16 sps:$4 sm:$0xff]   ;;  %v2742_v52 = vld [vmem:[%s3379_s18 + $0xa8] ss:$12 sps:$4 sm:$0xff]  }
  0xe8   : > { %1013 = vmatpush1.bf16.msra.mxu0 %v2633_v42  ;;  %v2709_v42 = vld [vmem:[%s3370_s14 + $0x288] ss:$16 sps:$4 sm:$0xff]  }
  0xe9   : > { %1083 = vmatpush1.bf16.msra.mxu1 %v2630_v41  ;;  %1014 = vmatprep.subr.bf16.mxu0 %v2634_v43  ;;  %v2711_v41 = vld [vmem:[%s3370_s14 + $0x28c] ss:$16 sps:$4 sm:$0xff]   ;;  %v2712_v43 = vld [vmem:[%s3370_s14 + $0x2a8] ss:$16 sps:$4 sm:$0xff]  }
  0xea   : > { %1084 = vmatprep.subr.bf16.mxu1 %v2638_v44  ;;  %v2738_v44 = vld [vmem:[%s3379_s18 + $0x7c] ss:$12 sps:$4 sm:$0xff]  }
  0xec   : > { %1015 = vmatpush1.bf16.msra.mxu0 %v2639_v46  ;;  %v2736_v46 = vld [vmem:[%s3379_s18 + $0x78] ss:$12 sps:$4 sm:$0xff]  }
  0xed   : > { %1085 = vmatpush1.bf16.msra.mxu1 %v2636_v45  ;;  %1016 = vmatprep.subr.bf16.mxu0 %v2640_v47  ;;  %v2717_v45 = vld [vmem:[%s3370_s14 + $0x2cc] ss:$16 sps:$4 sm:$0xff]   ;;  %v2715_v47 = vld [vmem:[%s3370_s14 + $0x2c8] ss:$16 sps:$4 sm:$0xff]  }
  0xee   : > { %1086 = vmatprep.subr.bf16.mxu1 %v2644_v48  ;;  %v2741_v48 = vld [vmem:[%s3379_s18 + $0x94] ss:$12 sps:$4 sm:$0xff]  }
  0xf0   : > { %1017 = vmatpush1.bf16.msra.mxu0 %v2645_v50  ;;  %v2739_v50 = vld [vmem:[%s3379_s18 + $0x90] ss:$12 sps:$4 sm:$0xff]  }
  0xf1   : > { %1087 = vmatpush1.bf16.msra.mxu1 %v2642_v49  ;;  %1018 = vmatprep.subr.bf16.mxu0 %v2646_v51  ;;  %v2720_v49 = vld [vmem:[%s3370_s14 + $0x2ec] ss:$16 sps:$4 sm:$0xff]   ;;  %v2744_v51 = vld [vmem:[%s3379_s18 + $0xac] ss:$12 sps:$4 sm:$0xff]  }
  0xf2   : > { %1088 = vmatprep.subr.bf16.mxu1 %v2650_v53  ;;  %v2718_v53 = vld [vmem:[%s3370_s14 + $0x2e8] ss:$16 sps:$4 sm:$0xff]  }
  0xf4   : > { %1019 = vmatpush1.bf16.msra.mxu0 %v2651_v55  ;;  %v2748_v55 = vld [vmem:[%s3379_s18 + $0xc8] ss:$12 sps:$4 sm:$0xff]  }
  0xf5   : > { %1089 = vmatpush1.bf16.msra.mxu1 %v2648_v54  ;;  %1020 = vmatprep.subr.bf16.mxu0 %v2652_v56  ;;  %v2747_v54 = vld [vmem:[%s3379_s18 + $0xc4] ss:$12 sps:$4 sm:$0xff]   ;;  %v2745_v56 = vld [vmem:[%s3379_s18 + $0xc0] ss:$12 sps:$4 sm:$0xff]  }
  0xf6   : > { %1090 = vmatprep.subr.bf16.mxu1 %v2656_v57  ;;  %v2749_v57 = vld [vmem:[%s3379_s18 + $0x8] ss:$12 sps:$4 sm:$0xff]  }
  0xf8   : > { %1021 = vmatpush1.bf16.msra.mxu0 %v2657_v59  ;;  %v2753_v59 = vld [vmem:[%s3379_s18 + $0xe0] ss:$12 sps:$4 sm:$0xff]  }
  0xf9   : > { %1091 = vmatpush1.bf16.msra.mxu1 %v2654_v58  ;;  %1022 = vmatprep.subr.bf16.mxu0 %v2658_v60  ;;  %v2752_v58 = vld [vmem:[%s3379_s18 + $0xdc] ss:$12 sps:$4 sm:$0xff]   ;;  %v2750_v60 = vld [vmem:[%s3379_s18 + $0xd8] ss:$12 sps:$4 sm:$0xff]  }
  0xfa   : > { %1092 = vmatprep.subr.bf16.mxu1 %v2662_v61  ;;  %v2754_v61 = vld [vmem:[%s3379_s18 + $0x20] ss:$12 sps:$4 sm:$0xff]  }
  0xfc   : > { %1023 = vmatpush1.bf16.msra.mxu0 %v2663_v63  ;;  %v2758_v63 = vld [vmem:[%s3379_s18 + $0xf8] ss:$12 sps:$4 sm:$0xff]  }
  0xfd   : > { %1093 = vmatpush1.bf16.msra.mxu1 %v2660_v62  ;;  %1024 = vmatprep.subr.bf16.mxu0 %v2664_v0  ;;  %v2757_v62 = vld [vmem:[%s3379_s18 + $0xf4] ss:$12 sps:$4 sm:$0xff]   ;;  %v2755_v0 = vld [vmem:[%s3379_s18 + $0xf0] ss:$12 sps:$4 sm:$0xff]  }
  0xfe   : > { %1094 = vmatprep.subr.bf16.mxu1 %v2668_v1  ;;  %v2759_v1 = vld [vmem:[%s3379_s18 + $0x38] ss:$12 sps:$4 sm:$0xff]  }
 0x100   : > { %1025 = vmatpush1.bf16.msra.mxu0 %v2669_v4  ;;  %v2760_v4 = vld [vmem:[%s3379_s18 + $0x108] ss:$12 sps:$4 sm:$0xff]  }
 0x101   : > { %1095 = vmatpush1.bf16.msra.mxu1 %v2666_v2  ;;  %1824 = vmatprep.subr.bf16.mxu0 %v2723_v10  ;;  %v2763_v2 = vld [vmem:[%s3379_s18 + $0x110] ss:$12 sps:$4 sm:$0xff]  }
 0x102   : > { %1096 = vmatprep.subr.bf16.mxu1 %v2675_v5  ;;  %v2764_v5 = vld [vmem:[%s3379_s18 + $0x50] ss:$12 sps:$4 sm:$0xff]  }
 0x103   : > { %1027 = vmatmul.mubr.bf16.vlgmr.msra.gmra.mrb[0].mxu0 %v2670_v6  ;;  %v2772_v10 = vld [vmem:[%s3379_s18 + $0x13c] ss:$12 sps:$4 sm:$0xff]  }
 0x104   : > { %1825 = vmatpush1.bf16.msra.mxu0 %v2721_v9  ;;  %v2769_v9 = vld [vmem:[%s3379_s18 + $0x68] ss:$12 sps:$4 sm:$0xff]  }
 0x105   : > { %1097 = vmatpush1.bf16.msra.mxu1 %v2673_v7  ;;  %1826 = vmatprep.subr.bf16.mxu0 %v2726_v12  ;;  %v2768_v7 = vld [vmem:[%s3379_s18 + $0x128] ss:$12 sps:$4 sm:$0xff]   ;;  %v2773_v12 = vld [vmem:[%s3379_s18 + $0x140] ss:$12 sps:$4 sm:$0xff]  }
 0x106   : > { %1098 = vmatprep.subr.bf16.mxu1 %v2678_v8  ;;  %v2765_v8 = vld [vmem:[%s3379_s18 + $0x120] ss:$12 sps:$4 sm:$0xff]  }
 0x108   : > { %1827 = vmatpush1.bf16.msra.mxu0 %v2724_v14  ;;  %v2777_v14 = vld [vmem:[%s3379_s18 + $0x154] ss:$12 sps:$4 sm:$0xff]  }
 0x109   : > { %1099 = vmatpush1.bf16.msra.mxu1 %v2676_v11  ;;  %1828 = vmatprep.subr.bf16.mxu0 %v2729_v16  ;;  %v2770_v11 = vld [vmem:[%s3379_s18 + $0x138] ss:$12 sps:$4 sm:$0xff]  }
 0x10a   : > { %1100 = vmatprep.subr.bf16.mxu1 %v2681_v13  ;;  %v2774_v13 = vld [vmem:[%s3379_s18 + $0x80] ss:$12 sps:$4 sm:$0xff]   ;;  %v2778_v16 = vld [vmem:[%s3379_s18 + $0x158] ss:$12 sps:$4 sm:$0xff]  }
 0x10c   : > { %1829 = vmatpush1.bf16.msra.mxu0 %v2727_v18  ;;  %v2782_v18 = vld [vmem:[%s3379_s18 + $0x16c] ss:$12 sps:$4 sm:$0xff]  }
 0x10d   : > { %1101 = vmatpush1.bf16.msra.mxu1 %v2679_v15  ;;  %1830 = vmatprep.subr.bf16.mxu0 %v2732_v19  ;;  %v2775_v15 = vld [vmem:[%s3379_s18 + $0x150] ss:$12 sps:$4 sm:$0xff]   ;;  %v2780_v19 = vld [vmem:[%s3379_s18 + $0x168] ss:$12 sps:$4 sm:$0xff]  }
 0x10e   : > { %1102 = vmatprep.subr.bf16.mxu1 %v2684_v17  ;;  %v2779_v17 = vld [vmem:[%s3379_s18 + $0x98] ss:$12 sps:$4 sm:$0xff]  }
 0x110   : > { %1831 = vmatpush1.bf16.msra.mxu0 %v2730_v22  ;;  %v2787_v22 = vld [vmem:[%s3379_s18 + $0x184] ss:$12 sps:$4 sm:$0xff]  }
 0x111   : > { %1103 = vmatpush1.bf16.msra.mxu1 %v2682_v20  ;;  %1832 = vmatprep.subr.bf16.mxu0 %v2735_v23  ;;  %v2783_v20 = vld [vmem:[%s3379_s18 + $0x170] ss:$12 sps:$4 sm:$0xff]   ;;  %v2809_v23 = vld [vmem:[%s3379_s18 + $0x248] ss:$12 sps:$4 sm:$0xff]  }
 0x112   : > { %1104 = vmatprep.subr.bf16.mxu1 %v2687_v21  ;;  %v2784_v21 = vld [vmem:[%s3379_s18 + $0xb0] ss:$12 sps:$4 sm:$0xff]  }
 0x114   : > { %1833 = vmatpush1.bf16.msra.mxu0 %v2733_v26 }
 0x115   : > { %1105 = vmatpush1.bf16.msra.mxu1 %v2685_v24  ;;  %1834 = vmatprep.subr.bf16.mxu0 %v2738_v44 }
 0x116   : > { %1106 = vmatprep.subr.bf16.mxu1 %v2690_v25 }
 0x118   : > { %1835 = vmatpush1.bf16.msra.mxu0 %v2736_v46 }
 0x119   : > { %1107 = vmatpush1.bf16.msra.mxu1 %v2688_v27  ;;  %1836 = vmatprep.subr.bf16.mxu0 %v2741_v48 }
 0x11a   : > { %1108 = vmatprep.subr.bf16.mxu1 %v2693_v28  ;;  %v478_v28 = vlaneseq }
 0x11c   : > { %1837 = vmatpush1.bf16.msra.mxu0 %v2739_v50 }
 0x11d   : > { %1109 = vmatpush1.bf16.msra.mxu1 %v2691_v29  ;;  %1838 = vmatprep.subr.bf16.mxu0 %v2744_v51  ;;  %v3542_v29 = vshrl.u32 %v478_v28, 7 }
 0x11e   : > { %1110 = vmatprep.subr.bf16.mxu1 %v2696_v30 }
 0x11f   : > { %v480_v30 = vsub.s32 0, %v3542_v29  ;;  %v488_v28 = vsub.s32 2, %v3542_v29 }
 0x120   : > { %1839 = vmatpush1.bf16.msra.mxu0 %v2742_v52 }
 0x121   : > { %1111 = vmatpush1.bf16.msra.mxu1 %v2694_v31  ;;  %1840 = vmatprep.subr.bf16.mxu0 %v2747_v54  ;;  %v3547_v31 = vld [vmem:[%s315_s1] sm:$0xf]  ;;  %v2813_v54 = vld [vmem:[%s3379_s18 + $0x188] ss:$12 sps:$4 sm:$0xff]  }
 0x122   : > { %1123 = vmatprep.subr.bf16.mxu1 %v2699_v32  ;;  %v484_v32 = vsub.s32 1, %v3542_v29 }
 0x124   : > { %1113 = vmatmul.mubr.bf16.vlgmr.msra.gmra.mrb[4].mxu1 %v2670_v6  ;;  %1841 = vmatpush1.bf16.msra.mxu0 %v2745_v56  ;;  %v2767_v6 = vld [vmem:[%s3379_s18 + $0x124] ss:$12 sps:$4 sm:$0xff]   ;;  %v2814_v56 = vld [vmem:[%s3379_s18 + $0x260] ss:$12 sps:$4 sm:$0xff]  }
 0x125   : > { %1124 = vmatpush1.bf16.msra.mxu1 %v2697_v33  ;;  %1155 = vmatprep.mubr.bf16.mxu1 %v3100_v3  ;;  %v2714_v3 = vld [vmem:[%s3370_s14 + $0x2ac] ss:$16 sps:$4 sm:$0xff]   ;;  %v481_v33 = vrot.slane %v3547_v31, %v480_v30 }
 0x126   : > { %1125 = vmatprep.subr.bf16.mxu1 %v2702_v34  ;;  %1842 = vmatprep.subr.bf16.mxu0 %v2752_v58  ;;  %v485_v34 = vrot.slane %v3547_v31, %v484_v32  ;;  %v2818_v58 = vld [vmem:[%s3379_s18 + $0x1a0] ss:$12 sps:$4 sm:$0xff]  }
 0x128   : > { %1843 = vmatpush1.bf16.msra.mxu0 %v2750_v60  ;;  %v2819_v60 = vld [vmem:[%s3379_s18 + $0x278] ss:$12 sps:$4 sm:$0xff]  }
 0x129   : > { %1126 = vmatpush1.bf16.msra.mxu1 %v2700_v35  ;;  %1844 = vmatprep.subr.bf16.mxu0 %v2757_v62  ;;  %v2823_v62 = vld [vmem:[%s3379_s18 + $0x1b8] ss:$12 sps:$4 sm:$0xff]  }
 0x12a   : > { %1127 = vmatprep.subr.bf16.mxu1 %v2705_v37 }
 0x12c   : > { %1845 = vmatpush1.bf16.msra.mxu0 %v2755_v0  ;;  %v2824_v0 = vld [vmem:[%s3379_s18 + $0x290] ss:$12 sps:$4 sm:$0xff]  }
 0x12d   : > { %1128 = vmatpush1.bf16.msra.mxu1 %v2703_v38 }
 0x12e   : > { %1129 = vmatprep.subr.bf16.mxu1 %v2708_v39 }
 0x131   : > { %1130 = vmatpush1.bf16.msra.mxu1 %v2706_v40 }
 0x132   : > { %1131 = vmatprep.subr.bf16.mxu1 %v2711_v41 }
 0x135   : > { %1132 = vmatpush1.bf16.msra.mxu1 %v2709_v42 }
 0x136   : > { %1133 = vmatprep.subr.bf16.mxu1 %v2714_v3 }
 0x139   : > { %1134 = vmatpush1.bf16.msra.mxu1 %v2712_v43 }
 0x13a   : > { %1135 = vmatprep.subr.bf16.mxu1 %v2717_v45 }
 0x13d   : > { %1136 = vmatpush1.bf16.msra.mxu1 %v2715_v47 }
 0x13e   : > { %1137 = vmatprep.subr.bf16.mxu1 %v2720_v49 }
 0x141   : > { %1138 = vmatpush1.bf16.msra.mxu1 %v2718_v53  ;;  %v2785_v53 = vld [vmem:[%s3379_s18 + $0x180] ss:$12 sps:$4 sm:$0xff]  }
 0x142   : > { %2403 = vmatprep.subr.bf16.mxu1 %v2748_v55  ;;  %v2790_v55 = vld [vmem:[%s3379_s18 + $0x19c] ss:$12 sps:$4 sm:$0xff]  }
 0x144   : > { %1156 = vmatmul.mubr.bf16.vlgmr.msra.gmra.mrb[4].mxu1 %v3425_v36  ;;  %v2762_v36 = vld [vmem:[%s3379_s18 + $0x10c] ss:$12 sps:$4 sm:$0xff]  }
 0x145   : > { %2404 = vmatpush3.bf16.msra.mxu1 %v2749_v57  ;;  %1846 = vmatprep.subr.bf16.mxu0 %v2762_v36  ;;  %v2788_v57 = vld [vmem:[%s3379_s18 + $0x198] ss:$12 sps:$4 sm:$0xff]   ;;  %v2828_v36 = vld [vmem:[%s3379_s18 + $0x1d0] ss:$12 sps:$4 sm:$0xff]  }
 0x146   : > { %2405 = vmatprep.subr.bf16.mxu1 %v2753_v59  ;;  %1847 = vmatpush1.bf16.msra.mxu0 %v2760_v4  ;;  %v2793_v59 = vld [vmem:[%s3379_s18 + $0x1b4] ss:$12 sps:$4 sm:$0xff]  }
 0x147   : > { %1848 = vmatprep.subr.bf16.mxu0 %v2767_v6  ;;  %v2829_v4 = vld [vmem:[%s3379_s18 + $0x2a8] ss:$12 sps:$4 sm:$0xff]  }
 0x148   : > { %v2833_v6 = vld [vmem:[%s3379_s18 + $0x1e8] ss:$12 sps:$4 sm:$0xff]  }
 0x149   : > { %2406 = vmatpush3.bf16.msra.mxu1 %v2754_v61  ;;  %v2791_v61 = vld [vmem:[%s3379_s18 + $0x1b0] ss:$12 sps:$4 sm:$0xff]  }
 0x14a   : > { %2407 = vmatprep.subr.bf16.mxu1 %v2758_v63  ;;  %1849 = vmatpush1.bf16.msra.mxu0 %v2765_v8  ;;  %v2796_v63 = vld [vmem:[%s3379_s18 + $0x1cc] ss:$12 sps:$4 sm:$0xff]  }
 0x14b   : > { %1850 = vmatprep.subr.bf16.mxu0 %v2772_v10  ;;  %v2834_v8 = vld [vmem:[%s3379_s18 + $0x2c0] ss:$12 sps:$4 sm:$0xff]  }
 0x14c   : > { %v2838_v10 = vld [vmem:[%s3379_s18 + $0x200] ss:$12 sps:$4 sm:$0xff]  }
 0x14d   : > { %2408 = vmatpush3.bf16.msra.mxu1 %v2759_v1  ;;  %v2794_v1 = vld [vmem:[%s3379_s18 + $0x1c8] ss:$12 sps:$4 sm:$0xff]  }
 0x14e   : > { %2409 = vmatprep.subr.bf16.mxu1 %v2763_v2  ;;  %1851 = vmatpush1.bf16.msra.mxu0 %v2770_v11  ;;  %v2799_v2 = vld [vmem:[%s3379_s18 + $0x1e4] ss:$12 sps:$4 sm:$0xff]   ;;  %v2805_v11 = vld [vmem:[%s3379_s18 + $0x214] ss:$12 sps:$4 sm:$0xff]  }
 0x14f   : > { %1852 = vmatprep.subr.bf16.mxu0 %v2777_v14  ;;  %v2843_v14 = vld [vmem:[%s3379_s18 + $0x218] ss:$12 sps:$4 sm:$0xff]  }
 0x151   : > { %2410 = vmatpush3.bf16.msra.mxu1 %v2764_v5  ;;  %v2797_v5 = vld [vmem:[%s3379_s18 + $0x1e0] ss:$12 sps:$4 sm:$0xff]  }
 0x152   : > { %2411 = vmatprep.subr.bf16.mxu1 %v2768_v7  ;;  %1853 = vmatpush1.bf16.msra.mxu0 %v2775_v15  ;;  %v2802_v7 = vld [vmem:[%s3379_s18 + $0x1fc] ss:$12 sps:$4 sm:$0xff]   ;;  %v2808_v15 = vld [vmem:[%s3379_s18 + $0x22c] ss:$12 sps:$4 sm:$0xff]  }
 0x153   : > { %1854 = vmatprep.subr.bf16.mxu0 %v2782_v18  ;;  %v2848_v18 = vld [vmem:[%s3379_s18 + $0x230] ss:$12 sps:$4 sm:$0xff]  }
 0x155   : > { %2412 = vmatpush3.bf16.msra.mxu1 %v2769_v9  ;;  %v2800_v9 = vld [vmem:[%s3379_s18 + $0x1f8] ss:$12 sps:$4 sm:$0xff]  }
 0x156   : > { %2413 = vmatprep.subr.bf16.mxu1 %v2773_v12  ;;  %1855 = vmatpush1.bf16.msra.mxu0 %v2780_v19  ;;  %v2839_v12 = vld [vmem:[%s3379_s18 + $0x2d8] ss:$12 sps:$4 sm:$0xff]  }
 0x157   : > { %1867 = vmatprep.subr.bf16.mxu0 %v2787_v22  ;;  %v2812_v19 = vld [vmem:[%s3379_s18 + $0x244] ss:$12 sps:$4 sm:$0xff]  }
 0x158   : > { %v2815_v22 = vld [vmem:[%s3379_s18 + $0x258] ss:$12 sps:$4 sm:$0xff]  }
 0x159   : > { %2414 = vmatpush3.bf16.msra.mxu1 %v2774_v13  ;;  %v2803_v13 = vld [vmem:[%s3379_s18 + $0x210] ss:$12 sps:$4 sm:$0xff]  }
 0x15a   : > { %2415 = vmatprep.subr.bf16.mxu1 %v2778_v16  ;;  %v2844_v16 = vld [vmem:[%s3379_s18 + $0x2f0] ss:$12 sps:$4 sm:$0xff]  }
 0x15d   : > { %2416 = vmatpush3.bf16.msra.mxu1 %v2779_v17  ;;  %v2806_v17 = vld [vmem:[%s3379_s18 + $0x228] ss:$12 sps:$4 sm:$0xff]  }
 0x15e   : > { %2417 = vmatprep.subr.bf16.mxu1 %v2783_v20  ;;  %v2810_v20 = vld [vmem:[%s3379_s18 + $0x240] ss:$12 sps:$4 sm:$0xff]  }
 0x161   : > { %2418 = vmatpush3.bf16.msra.mxu1 %v2784_v21  ;;  %v2817_v21 = vld [vmem:[%s3379_s18 + $0x25c] ss:$12 sps:$4 sm:$0xff]  }
 0x162   : > { %2425 = vmatprep.subr.bf16.mxu1 %v2809_v23  ;;  %v2822_v23 = vld [vmem:[%s3379_s18 + $0x274] ss:$12 sps:$4 sm:$0xff]  }
 0x1b7   : > { %v1071_v24 = vpop.f32.mrb[0].mxu1 }
 0x1b8   : > { %v1073_v25 = vpop.f32.mrb[1].mxu1 }
 0x1b9   : > { %v1075_v26 = vpop.f32.mrb[2].mxu1 }
 0x1ba   : > { %v1077_v27 = vpop.f32.mrb[3].mxu1 }
 0x1d6   : > { %v1028_v35 = vpop.f32.mrb[0].mxu0 }
 0x1d7   : > { %v1029_v37 = vadd.f32 %v1028_v35, %v481_v33  ;;  %v1030_v38 = vpop.f32.mrb[1].mxu0  ;;  %v2837_v35 = vld [vmem:[%s3379_s18 + $0x2bc] ss:$12 sps:$4 sm:$0xff]  }
 0x1d8   : > { %v1031_v39 = vadd.f32 %v1030_v38, %v485_v34  ;;  %v1032_v40 = vpop.f32.mrb[2].mxu0  ;;  %v2835_v38 = vld [vmem:[%s3379_s18 + $0x2b8] ss:$12 sps:$4 sm:$0xff]  }
 0x1d9   : > { %v1072_v41 = vadd.f32 %v1071_v24, %v1029_v37  ;;  %v1033_v42 = vadd.f32 %v1032_v40, %v481_v33  ;;  %v1034_v3 = vpop.f32.mrb[3].mxu0  ;;  %v2820_v24 = vld [vmem:[%s3379_s18 + $0x270] ss:$12 sps:$4 sm:$0xff]   ;;  %v2830_v33 = vld [vmem:[%s3379_s18 + $0x2a0] ss:$12 sps:$4 sm:$0xff]   ;;  %v489_v37 = vrot.slane %v3547_v31, %v488_v28 }
 0x1da   : > { %v1074_v43 = vadd.f32 %v1073_v25, %v1031_v39  ;;  %v1035_v44 = vadd.f32 %v1034_v3, %v485_v34  ;;  %v2827_v25 = vld [vmem:[%s3379_s18 + $0x28c] ss:$12 sps:$4 sm:$0xff]   ;;  %v492_v34 = vsub.s32 3, %v3542_v29  ;;  %v2842_v40 = vld [vmem:[%s3379_s18 + $0x2d4] ss:$12 sps:$4 sm:$0xff]  }
 0x1db   : > { %v1076_v45 = vadd.f32 %v1075_v26, %v1033_v42  ;;  %v1166_v47 = vmax.f32 %v1072_v41, 0.0  ;;  %v2825_v26 = vld [vmem:[%s3379_s18 + $0x288] ss:$12 sps:$4 sm:$0xff]  }
 0x1dc   : > { %v1078_v46 = vadd.f32 %v1077_v27, %v1035_v44  ;;  %v1167_v49 = vmax.f32 %v1074_v43, 0.0  ;;  %v2832_v27 = vld [vmem:[%s3379_s18 + $0x2a4] ss:$12 sps:$4 sm:$0xff]   ;;  %v493_v39 = vrot.slane %v3547_v31, %v492_v34  ;;  %v2845_v31 = vld [vmem:[%s3379_s18 + $0x2e8] ss:$12 sps:$4 sm:$0xff]  }
 0x1dd   : > { %v1170_v48 = vmax.f32 %v1076_v45, 0.0  ;;  %v2840_v45 = vld [vmem:[%s3379_s18 + $0x2d0] ss:$12 sps:$4 sm:$0xff]  }
 0x1de   : > { %v1171_v50 = vmax.f32 %v1078_v46, 0.0 }
 0x1df   : > { %v1180_v51 = vpack.c.bf16 %v1170_v48, %v1166_v47  ;;  %v2847_v48 = vld [vmem:[%s3379_s18 + $0x2ec] ss:$12 sps:$4 sm:$0xff]  }
 0x1e0   : > { %v1181_v52 = vpack.c.bf16 %v1171_v50, %v1167_v49 }
 0x1e2   : > { %1856 = vmatprep.mubr.bf16.mxu0 %v1181_v52  ;;  %1942 = vmatprep.mubr.bf16.mxu1 %v1181_v52 }
 0x1e3   : > { %1857 = vmatmul.mubr.bf16.vlgmr.msra.gmra.mrb[4].mxu0 %v1180_v51  ;;  %1943 = vmatmul.mubr.bf16.vlgmr.msra.gmra.mrb[8].mxu1 %v1180_v51 }
 0x1e4   : > { %1868 = vmatpush1.bf16.msra.mxu0 %v2785_v53  ;;  %2426 = vmatpush3.bf16.msra.mxu1 %v2813_v54 }
 0x1e5   : > { %1869 = vmatprep.subr.bf16.mxu0 %v2790_v55  ;;  %2427 = vmatprep.subr.bf16.mxu1 %v2814_v56 }
 0x1e8   : > { %1870 = vmatpush1.bf16.msra.mxu0 %v2788_v57  ;;  %2428 = vmatpush3.bf16.msra.mxu1 %v2818_v58 }
 0x1e9   : > { %1871 = vmatprep.subr.bf16.mxu0 %v2793_v59  ;;  %2429 = vmatprep.subr.bf16.mxu1 %v2819_v60 }
 0x1ec   : > { %1872 = vmatpush1.bf16.msra.mxu0 %v2791_v61  ;;  %2430 = vmatpush3.bf16.msra.mxu1 %v2823_v62  ;;  %v1174_v62 = vld [vmem:[#allocation2] sm:$0xff] }
 0x1ed   : > { %1873 = vmatprep.subr.bf16.mxu0 %v2796_v63  ;;  %2431 = vmatprep.subr.bf16.mxu1 %v2824_v0  ;;  %v1175_v0 = vld [vmem:[#allocation2 + $0x8] sm:$0xff] }
 0x1f0   : > { %1874 = vmatpush1.bf16.msra.mxu0 %v2794_v1  ;;  %2432 = vmatpush3.bf16.msra.mxu1 %v2828_v36 }
 0x1f1   : > { %1875 = vmatprep.subr.bf16.mxu0 %v2799_v2  ;;  %2433 = vmatprep.subr.bf16.mxu1 %v2829_v4  ;;  %v1177_v2 = vld [vmem:[#allocation2 + $0x18] sm:$0xff] }
 0x1f4   : > { %1876 = vmatpush1.bf16.msra.mxu0 %v2797_v5  ;;  %2434 = vmatpush3.bf16.msra.mxu1 %v2833_v6 }
 0x1f5   : > { %1877 = vmatprep.subr.bf16.mxu0 %v2802_v7  ;;  %2435 = vmatprep.subr.bf16.mxu1 %v2834_v8  ;;  %v1178_v8 = vld [vmem:[#allocation2 + $0x20] sm:$0xff] }
 0x1f8   : > { %1878 = vmatpush1.bf16.msra.mxu0 %v2800_v9  ;;  %2436 = vmatpush3.bf16.msra.mxu1 %v2838_v10  ;;  %v1176_v9 = vld [vmem:[#allocation2 + $0x10] sm:$0xff] }
 0x1f9   : > { %1879 = vmatprep.subr.bf16.mxu0 %v2805_v11  ;;  %2437 = vmatprep.subr.bf16.mxu1 %v2839_v12 }
 0x1fc   : > { %1880 = vmatpush1.bf16.msra.mxu0 %v2803_v13  ;;  %2438 = vmatpush3.bf16.msra.mxu1 %v2843_v14 }
 0x1fd   : > { %1881 = vmatprep.subr.bf16.mxu0 %v2808_v15  ;;  %2439 = vmatprep.subr.bf16.mxu1 %v2844_v16 }
 0x200   : > { %1882 = vmatpush1.bf16.msra.mxu0 %v2806_v17  ;;  %2440 = vmatpush3.bf16.msra.mxu1 %v2848_v18  ;;  %v1179_v17 = vld [vmem:[#allocation2 + $0x28] sm:$0xff] }
 0x201   : > { %1883 = vmatprep.subr.bf16.mxu0 %v2812_v19 }
 0x204   : > { %1884 = vmatpush1.bf16.msra.mxu0 %v2810_v20 }
 0x205   : > { %1885 = vmatprep.subr.bf16.mxu0 %v2817_v21 }
 0x208   : > { %1886 = vmatpush1.bf16.msra.mxu0 %v2815_v22 }
 0x209   : > { %1887 = vmatprep.subr.bf16.mxu0 %v2822_v23  ;;  %v2014_v23 = vld [vmem:[#allocation11] sm:$0x7] (!%p2396_p12) }
 0x20c   : > { %1888 = vmatpush1.bf16.msra.mxu0 %v2820_v24 }
 0x20d   : > { %1889 = vmatprep.subr.bf16.mxu0 %v2827_v25  ;;  %v2019_v25 = vrot.slane (!%p2396_p12), %v2014_v23, %v480_v30 }
 0x210   : > { %1890 = vmatpush1.bf16.msra.mxu0 %v2825_v26  ;;  %v2023_v26 = vrot.slane (!%p2396_p12), %v2014_v23, %v484_v32 }
 0x211   : > { %1891 = vmatprep.subr.bf16.mxu0 %v2832_v27 }
 0x214   : > { %1892 = vmatpush1.bf16.msra.mxu0 %v2830_v33  ;;  %v2027_v33 = vrot.slane (!%p2396_p12), %v2014_v23, %v488_v28 }
 0x215   : > { %1893 = vmatprep.subr.bf16.mxu0 %v2837_v35 }
 0x217   : > { %v1157_v41 = vpop.f32.mrb[4].mxu1 }
 0x218   : > { %v2455_v42 = vadd.f32 %v1157_v41, %v489_v37  ;;  %v1159_v3 = vpop.f32.mrb[5].mxu1  ;;  %1894 = vmatpush1.bf16.msra.mxu0 %v2835_v38 }
 0x219   : > { %v2456_v43 = vadd.f32 %v1159_v3, %v493_v39  ;;  %v1161_v44 = vpop.f32.mrb[6].mxu1  ;;  %1895 = vmatprep.subr.bf16.mxu0 %v2842_v40 }
 0x21a   : > { %v2457_v46 = vadd.f32 %v1161_v44, %v489_v37  ;;  %v1163_v47 = vpop.f32.mrb[7].mxu1  ;;  %v1168_v50 = vmax.f32 %v2455_v42, 0.0 }
 0x21b   : > { %v2458_v49 = vadd.f32 %v1163_v47, %v493_v39  ;;  %v1169_v52 = vmax.f32 %v2456_v43, 0.0 }
 0x21c   : > { %v1172_v51 = vmax.f32 %v2457_v46, 0.0  ;;  %1896 = vmatpush1.bf16.msra.mxu0 %v2840_v45 }
 0x21d   : > { %v1173_v53 = vmax.f32 %v2458_v49, 0.0  ;;  %1897 = vmatprep.subr.bf16.mxu0 %v2847_v48 }
 0x21e   : > { %v1182_v54 = vpack.c.bf16 %v1172_v51, %v1168_v50 }
 0x21f   : > { %v1183_v55 = vpack.c.bf16 %v1173_v53, %v1169_v52 }
 0x220   : > { %1898 = vmatpush1.bf16.msra.mxu0 %v2845_v31 }
 0x221   : > { %1899 = vmatprep.mubr.bf16.mxu0 %v1183_v55  ;;  %1983 = vmatprep.mubr.bf16.mxu1 %v1183_v55 }
 0x222   : > { %1984 = vmatmul.mubr.bf16.vlgmr.msra.gmra.mrb[12].mxu1 %v1182_v54 }
 0x223   : > { %1900 = vmatmul.mubr.bf16.vlgmr.msra.gmra.mrb[4].mxu0 %v1182_v54 }
 0x2b6   : > { %v2419_v56 = vpop.f32.mrb[8].mxu1 }
 0x2b7   : > { %v2420_v57 = vpop.f32.mrb[9].mxu1 }
 0x2b8   : > { %v2421_v58 = vadd.f32 %v2420_v57, %v2419_v56  ;;  %v2422_v59 = vpop.f32.mrb[10].mxu1 }
 0x2b9   : > { %v2423_v60 = vpop.f32.mrb[11].mxu1 }
 0x2ba   : > { %v2424_v61 = vadd.f32 %v2423_v60, %v2422_v59 }
 0x2f5   : > { %v2441_v63 = vpop.f32.mrb[12].mxu1 }
 0x2f6   : > { %v1901_v1 = vpop.f32.mrb[4].mxu0  ;;  %v2442_v36 = vpop.f32.mrb[13].mxu1 }
 0x2f7   : > { %v1992_v4 = vadd.f32 %v1901_v1, %v1174_v62  ;;  %v2443_v5 = vadd.f32 %v2442_v36, %v2441_v63  ;;  %v1903_v6 = vpop.f32.mrb[5].mxu0  ;;  %v2444_v7 = vpop.f32.mrb[14].mxu1 }
 0x2f8   : > { %v1993_v10 = vadd.f32 %v1903_v6, %v1175_v0  ;;  %v1905_v11 = vpop.f32.mrb[6].mxu0  ;;  %v2445_v12 = vpop.f32.mrb[15].mxu1 }
 0x2f9   : > { %1998 = vst [vmem:[#allocation2] sm:$0xff] %v1992_v4  ;;  %v1986_v13 = vadd.f32 %v2443_v5, %v2421_v58  ;;  %v1995_v14 = vadd.f32 %v1905_v11, %v1177_v2  ;;  %v2446_v15 = vadd.f32 %v2445_v12, %v2444_v7  ;;  %v1907_v16 = vpop.f32.mrb[7].mxu0  ;;  %2007 = sbr.rel (%p2396_p12) target bundleno = 778 (0x30a), region = 68 }
 0x2fa   : > { %1999 = vst [vmem:[#allocation2 + $0x8] sm:$0xff] %v1993_v10  ;;  %v1996_v18 = vadd.f32 %v1907_v16, %v1178_v8 }
 0x2fb   : > { %v1994_v19 = vadd.f32 %v1986_v13, %v1176_v9  ;;  %2001 = vst [vmem:[#allocation2 + $0x18] sm:$0xff] %v1995_v14  ;;  %v1989_v20 = vadd.f32 %v2446_v15, %v2424_v61 }
 0x2fc   : > { %2002 = vst [vmem:[#allocation2 + $0x20] sm:$0xff] %v1996_v18 }
 0x2fd   : > { %2000 = vst [vmem:[#allocation2 + $0x10] sm:$0xff] %v1994_v19  ;;  %v1997_v21 = vadd.f32 %v1989_v20, %v1179_v17 }
 0x2ff   : > { %2003 = vst [vmem:[#allocation2 + $0x28] sm:$0xff] %v1997_v21 }
 0x300   : > { %v2008_v22 = vld [vmem:[#allocation2] sm:$0xff] }
 0x301   : > { %v2009_v24 = vld [vmem:[#allocation2 + $0x8] sm:$0xff]  ;;  %v2031_v38 = vadd.f32 %v2019_v25, %v2008_v22 }
 0x302   : > { %v2011_v34 = vld [vmem:[#allocation2 + $0x18] sm:$0xff]  ;;  %v2032_v39 = vadd.f32 %v2023_v26, %v2009_v24 }
 0x303   : > { %v2012_v35 = vld [vmem:[#allocation2 + $0x20] sm:$0xff]  ;;  %v2034_v41 = vadd.f32 %v2019_v25, %v2011_v34  ;;  %2037 = vst [vmem:[#allocation12] sm:$0xff] %v2031_v38 }
 0x304   : > { %v2010_v27 = vld [vmem:[#allocation2 + $0x10] sm:$0xff]  ;;  %v2035_v42 = vadd.f32 %v2023_v26, %v2012_v35  ;;  %2038 = vst [vmem:[#allocation12 + $0x8] sm:$0xff] %v2032_v39 }
 0x305   : > { %v2033_v40 = vadd.f32 %v2027_v33, %v2010_v27  ;;  %2040 = vst [vmem:[#allocation12 + $0x18] sm:$0xff] %v2034_v41 }
 0x306   : > { %v2013_v37 = vld [vmem:[#allocation2 + $0x28] sm:$0xff]  ;;  %2041 = vst [vmem:[#allocation12 + $0x20] sm:$0xff] %v2035_v42 }
 0x307   : > { %v2036_v3 = vadd.f32 %v2027_v33, %v2013_v37  ;;  %2039 = vst [vmem:[#allocation12 + $0x10] sm:$0xff] %v2033_v40 }
 0x309   : > { %2042 = vst [vmem:[#allocation12 + $0x28] sm:$0xff] %v2036_v3 }
 0x30a PF: > { %p2511_p11 = scmp.eq.s32.totalorder %s3163_s24, 2  ;;  %s3101_s30 = smov [#allocation12]  }
 0x30b   : > { %s2053_s25 = sshll.u32 %s3101_s30, 4  ;;  %s2054_s25 = int_to_ptr.vmem [resolvable:$true] %s2053_s25 }
 0x30c   : > { %s2995_s8 = scalar_lea.vmem %s2054_s25, 768  ;;  %p3002_p6 = scmp.lt.s32.totalorder %s2054_s25, %s2054_s25 }
 0x30d   : > { %p2996_p0 = scmp.ne.s32.totalorder %s2054_s25, %s2995_s8  ;;  %p3003_p8 = scmp.lt.s32.totalorder %s2995_s8, %s2995_s8 }
 0x30f   : > { %p2997_p7 = pnand %p2996_p0, %p2511_p11  ;;  %p3004_p13 = por %p3003_p8, %p3002_p6 }
 0x311   : > { %p2998_p10 = pneg %p2997_p7 }
 0x313   : > { %p3005_p3 = pnand %p3004_p13, %p2998_p10 }
 0x315   : > { %3008 = shalt.err (!%p3005_p3)
}
 0x316   : > { %s3705_s16 = sld [smem:[#allocation23_spill]] }
 0x31c   : > { %s3009_s29 = scalar_lea.hbm %s3705_s16, 768 }
 0x31d   : > { %p3010_p1 = scmp.ne.s32.totalorder %s3705_s16, %s3009_s29  ;;  %p3015_p5 = scmp.lt.u32.totalorder %s3009_s29, %s3705_s16 }
 0x31f   : > { %p3011_p4 = pnand %p3010_p1, %p2511_p11 }
 0x321   : > { %p3012_p9 = pneg %p3011_p4 }
 0x323   : > { %p3017_p2 = pnand %p3015_p5, %p3012_p9 }
 0x325   : > { %3020 = shalt.err (!%p3017_p2)
}
 0x326   : > { %s3102_s13 = smov 384   ;;  %s3103_s7 = smov 24  }
 0x327   : > { %2486 = dma.vmem_to_hbm [thread:$0]  (%p2511_p11), %s2054_s25, 768, %s3705_s16, [#allocation5], %s3102_s13, %s3102_s13, %s3103_s7  }
 0x328   : > { %3062 = dma.done.wait (%p2511_p11), [#allocation5], 768  }
 0x329   : > { %3064 = vsyncadd (%p2511_p11), [#allocation5], 4294966528 }
 0x32a PF: > { %s23_s23 = sadd.s32 1, %s3087_s23   ;;  %s3706_s6 = sld [smem:[#allocation20_spill]] }
 0x32b   : > { %p20_p12 = scmp.ge.s32.totalorder %s23_s23, 5   ;;  %s3707_s14 = sld [smem:[#allocation19_spill]] }
 0x32c   : > { %s3708_s18 = smov %s3071_s19  ;;  %s3709_s19 = smov %s3075_s20 }
 0x32d   : > { %s3711_s21 = smov %s3083_s22  ;;  %22 = sbr.rel (!%p20_p12) target bundleno = 12 (0xc), region = 120 }
 0x330   : > { %s3710_s20 = smov %s3706_s6 }
 0x331   : > { %s3712_s22 = smov %s3707_s14 }
 0x334   :  { %2069 = vsyncpa [#allocation4], 1 }
 0x335   :  { %2071 = vsyncpa [#allocation4 + $0x1], 1 }
 0x336   :  { %2072 = vsyncpa [#allocation7], 1 }
 0x337   :  { %2074 = vsyncpa [#allocation7 + $0x1], 1 }
 0x338   :  { %2075 = vsyncpa [#allocation10], 1 }
 0x339   :  { %2077 = vsyncpa [#allocation10 + $0x1], 1 }
 0x33a   :  { %2078 = vsyncpa [#allocation5], 1 }
 0x33b   :  { %2080 = vsyncpa [#allocation5 + $0x1], 1 }

</bundles_post_ra>
